<compile_context>
chip_gen: v7x
topology: tpu7x:2x2x1
jax: 0.10.0
libtpu: 0.0.40
codegen_flags: <defaults>
</compile_context>

<pallas_src>
import jax
import jax.numpy as jnp
from jax.experimental import pallas as pl
from jax.experimental.pallas import tpu as pltpu


# ---------------------------------------------------------------------------
# Kernel: K-tiled streaming first matmul + one-shot epilogue for layers 1b-4
# ---------------------------------------------------------------------------
def _net_kernel(x_ref, w1_ref, b1_ref, w2_ref, b2_ref, w3_ref, b3_ref,
                w4_ref, b4_ref, o_ref, acc_ref):
    k = pl.program_id(0)

    @pl.when(k == 0)
    def _init():
        acc_ref[...] = jnp.zeros_like(acc_ref)

    # Partial product of Conv2d(Cin, 64, 1x1):  acc += x[:, k*tk:(k+1)*tk] @ W1[k]
    acc_ref[...] += jnp.dot(x_ref[...], w1_ref[...],
                            preferred_element_type=jnp.float32)

    @pl.when(k == pl.num_programs(0) - 1)
    def _epilogue():
        # Bias + ReLU of layer 1, then the small layers (all VMEM-resident).
        h = jnp.maximum(acc_ref[...] + b1_ref[...], 0.0)                 # (Np, 64)
        h = jnp.maximum(
            jnp.dot(h, w2_ref[...], preferred_element_type=jnp.float32)
            + b2_ref[...], 0.0)                                          # (Np, 64)
        h = jnp.maximum(
            jnp.dot(h, w3_ref[...], preferred_element_type=jnp.float32)
            + b3_ref[...], 0.0)                                          # (Np, 2)
        # Flatten (1x1 spatial -> identity) + Linear(2, 2)
        o_ref[...] = (
            jnp.dot(h, w4_ref[...], preferred_element_type=jnp.float32)
            + b4_ref[...]).astype(o_ref.dtype)                           # (Np, 2)


def _round_up(x, m):
    return -(-x // m) * m


def net_forward(x_nchw, params, *, tk=65536):
    """Run the Net forward pass.

    x_nchw: (N, Cin, 1, 1) float32 (PyTorch NCHW layout, 1x1 spatial).
    params: dict of pre-transposed (C_in, C_out) weights and (1, C_out) biases.
    tk:     preferred K (channel) tile.  65536 -> 16 MiB/W1 buffer fp32, which
            double-buffers inside v7x's 64 MiB VMEM; v5e/v6e can use 131072.
    Returns (N, 2) float32, matching PyTorch's Flatten+Linear output.
    """
    n, c_in, h, w = x_nchw.shape
    assert h == 1 and w == 1, "Flatten + Linear(2, 2) implies 1x1 spatial"
    x2d = x_nchw.reshape(n, c_in)
    w1 = params["w1"]

    # Pad rows to a full sublane group; pad channels to a multiple of the
    # K tile with zeros (zero rows of W1 / zero cols of x add nothing).
    n_pad = max(8, _round_up(n, 8))
    tk = max(128, _round_up(min(tk, _round_up(c_in, 128)), 128))
    c_pad = _round_up(c_in, tk)
    n_k = c_pad // tk
    # NOTE: at the real Cin (5,292,032) prefer a tk that divides Cin exactly
    # so this pad does not materialize an extra HBM copy of W1.
    if n_pad != n or c_pad != c_in:
        x2d = jnp.pad(x2d, ((0, n_pad - n), (0, c_pad - c_in)))
    if c_pad != c_in:
        w1 = jnp.pad(w1, ((0, c_pad - c_in), (0, 0)))

    args = (x2d, w1, params["b1"],
            params["w2"], params["b2"],
            params["w3"], params["b3"],
            params["w4"], params["b4"])

    in_specs = [
        pl.BlockSpec((n_pad, tk), lambda k: (0, k)),   # x: stream K tiles
        pl.BlockSpec((tk, 64),    lambda k: (k, 0)),   # W1: stream K tiles
        pl.BlockSpec((1, 64),     lambda k: (0, 0)),   # b1: resident
        pl.BlockSpec((64, 64),    lambda k: (0, 0)),   # w2: resident
        pl.BlockSpec((1, 64),     lambda k: (0, 0)),   # b2
        pl.BlockSpec((64, 2),     lambda k: (0, 0)),   # w3
        pl.BlockSpec((1, 2),      lambda k: (0, 0)),   # b3
        pl.BlockSpec((2, 2),      lambda k: (0, 0)),   # w4
        pl.BlockSpec((1, 2),      lambda k: (0, 0)),   # b4
    ]
    out_spec = pl.BlockSpec((n_pad, 2), lambda k: (0, 0))

    # VMEM budget: double-buffered x and W1 tiles + resident small weights
    # + accumulator, with slack.  Clamp into a sane range.
    x_item = x2d.dtype.itemsize
    w_item = w1.dtype.itemsize
    vmem_bytes = (2 * (n_pad * tk * x_item + tk * 64 * w_item)
                  + n_pad * 64 * 4 + (2 << 20))
    vmem_limit = int(min(max(vmem_bytes, 8 << 20), 100 << 20))

    # Memory-bound kernel: tell XLA how heavy it is so it can overlap it.
    cost = pl.CostEstimate(
        flops=int(2 * n_pad * c_pad * 64 + 2 * n_pad * (64 * 64 + 64 * 2 + 2 * 2)),
        transcendentals=0,
        bytes_accessed=int(c_pad * 64 * w_item + n_pad * c_pad * x_item
                           + n_pad * 2 * 4),
    )

    out = pl.pallas_call(
        _net_kernel,
        out_shape=jax.ShapeDtypeStruct((n_pad, 2), jnp.float32),
        grid_spec=pltpu.PrefetchScalarGridSpec(
            num_scalar_prefetch=0,
            grid=(n_k,),
            in_specs=in_specs,
            out_specs=out_spec,
            scratch_shapes=[pltpu.VMEM((n_pad, 64), jnp.float32)],
        ),
        compiler_params=pltpu.CompilerParams(
            dimension_semantics=("arbitrary",),
            vmem_limit_bytes=vmem_limit,
        ),
        cost_estimate=cost,
    )(*args)
    return out[:n]


# ---------------------------------------------------------------------------
# Deterministic parameter init (PyTorch-style uniform fan-in bounds)
# ---------------------------------------------------------------------------
def init_params(key, c_in):
    def layer(k, fan_in, fan_out):
        kw, kb = jax.random.split(k)
        bound = 1.0 / jnp.sqrt(jnp.float32(fan_in))
        w = jax.random.uniform(kw, (fan_in, fan_out), jnp.float32, -bound, bound)
        b = jax.random.uniform(kb, (1, fan_out), jnp.float32, -bound, bound)
        return w, b

    k1, k2, k3, k4 = jax.random.split(key, 4)
    w1, b1 = layer(k1, c_in, 64)   # Conv2d(Cin, 64, 1x1)
    w2, b2 = layer(k2, 64, 64)     # Conv2d(64, 64, 1x1)
    w3, b3 = layer(k3, 64, 2)      # Conv2d(64, 2, 1x1)
    w4, b4 = layer(k4, 2, 2)       # Linear(2, 2)
    return dict(w1=w1, b1=b1, w2=w2, b2=b2, w3=w3, b3=b3, w4=w4, b4=b4)


# Pure-JAX reference for a sanity check.
def net_forward_ref(x_nchw, p):
    n, c_in, _, _ = x_nchw.shape
    h = x_nchw.reshape(n, c_in)
    h = jnp.maximum(h @ p["w1"] + p["b1"], 0.0)
    h = jnp.maximum(h @ p["w2"] + p["b2"], 0.0)
    h = jnp.maximum(h @ p["w3"] + p["b3"], 0.0)
    return h @ p["w4"] + p["b4"]


if __name__ == "__main__":
    N = 2
    C_IN = 4096          # small stand-in for the module's 5_292_032 channels
    TK = 1024            # small tile so the demo exercises a multi-step K grid

    key = jax.random.PRNGKey(0)
    k_params, k_x = jax.random.split(key)

    params = init_params(k_params, C_IN)
    x = jax.random.normal(k_x, (N, C_IN, 1, 1), jnp.float32)  # NCHW, 1x1 spatial

    out = net_forward(x, params, tk=TK)
    out = jax.block_until_ready(out)

    ref = net_forward_ref(x, params)
    assert out.shape == (N, 2)
    assert jnp.allclose(out, ref, atol=1e-4, rtol=1e-4), "mismatch vs JAX reference"

    print("KERNEL_OK")
</pallas_src>

<mosaic_0001>
module attributes {stable_mosaic.version = 11 : i64} {
  func.func @_net_kernel(%arg0: i32, %arg1: memref<8x1024xf32, #tpu.memory_space<vmem>>, %arg2: memref<1024x64xf32, #tpu.memory_space<vmem>>, %arg3: memref<1x64xf32, #tpu.memory_space<vmem>>, %arg4: memref<64x64xf32, #tpu.memory_space<vmem>>, %arg5: memref<1x64xf32, #tpu.memory_space<vmem>>, %arg6: memref<64x2xf32, #tpu.memory_space<vmem>>, %arg7: memref<1x2xf32, #tpu.memory_space<vmem>>, %arg8: memref<2x2xf32, #tpu.memory_space<vmem>>, %arg9: memref<1x2xf32, #tpu.memory_space<vmem>>, %arg10: memref<8x2xf32, #tpu.memory_space<vmem>>, %arg11: memref<8x64xf32, #tpu.memory_space<vmem>>) attributes {dimension_semantics = [#tpu.dimension_semantics<arbitrary>], iteration_bounds = array<i64: 4>, scalar_prefetch = 0 : i64, scratch_operands = 1 : i64, tpu.core_type = #tpu.core_type<tc>, window_params = [{transform_indices = @transform_0, window_bounds = array<i64: 8, 1024>}, {transform_indices = @transform_1, window_bounds = array<i64: 1024, 64>}, {pipeline_mode = #tpu.pipeline_mode<synchronous>, transform_indices = @transform_2, window_bounds = array<i64: 1, 64>}, {pipeline_mode = #tpu.pipeline_mode<synchronous>, transform_indices = @transform_3, window_bounds = array<i64: 64, 64>}, {pipeline_mode = #tpu.pipeline_mode<synchronous>, transform_indices = @transform_4, window_bounds = array<i64: 1, 64>}, {pipeline_mode = #tpu.pipeline_mode<synchronous>, transform_indices = @transform_5, window_bounds = array<i64: 64, 2>}, {pipeline_mode = #tpu.pipeline_mode<synchronous>, transform_indices = @transform_6, window_bounds = array<i64: 1, 2>}, {pipeline_mode = #tpu.pipeline_mode<synchronous>, transform_indices = @transform_7, window_bounds = array<i64: 2, 2>}, {pipeline_mode = #tpu.pipeline_mode<synchronous>, transform_indices = @transform_8, window_bounds = array<i64: 1, 2>}, {pipeline_mode = #tpu.pipeline_mode<synchronous>, transform_indices = @transform_9, window_bounds = array<i64: 8, 2>}]} {
    %c0_i32 = arith.constant 0 : i32
    %0 = arith.cmpi eq, %arg0, %c0_i32 : i32
    %1 = arith.extui %0 : i1 to i32
    %c0_i32_0 = arith.constant 0 : i32
    %2 = arith.cmpi ne, %1, %c0_i32_0 : i32
    scf.if %2 {
      %cst_9 = arith.constant 0.000000e+00 : f32
      %12 = vector.broadcast %cst_9 : f32 to vector<8x64xf32>
      %c0_10 = arith.constant 0 : index
      %c0_11 = arith.constant 0 : index
      %13 = vector.load %arg11[%c0_10, %c0_11] : memref<8x64xf32, #tpu.memory_space<vmem>>, vector<8x64xf32>
      tpu.vector_store %arg11[%c0_10, %c0_11], %12 {strides = array<i32>} : memref<8x64xf32, #tpu.memory_space<vmem>>, vector<8x64xf32>,
    } else {
    }
    %c0 = arith.constant 0 : index
    %c0_1 = arith.constant 0 : index
    %3 = vector.load %arg11[%c0, %c0_1] : memref<8x64xf32, #tpu.memory_space<vmem>>, vector<8x64xf32>
    %c0_2 = arith.constant 0 : index
    %c0_3 = arith.constant 0 : index
    %4 = vector.load %arg1[%c0_2, %c0_3] : memref<8x1024xf32, #tpu.memory_space<vmem>>, vector<8x1024xf32>
    %c0_4 = arith.constant 0 : index
    %c0_5 = arith.constant 0 : index
    %5 = vector.load %arg2[%c0_4, %c0_5] : memref<1024x64xf32, #tpu.memory_space<vmem>>, vector<1024x64xf32>
    %cst = arith.constant dense<0.000000e+00> : vector<8x64xf32>
    %6 = tpu.matmul %4, %5, %cst {dimension_numbers = #tpu.dot_dimension_numbers<[1], [0], [0], [1], [0, 0, 1, 1], [], []>} : vector<8x1024xf32>, vector<1024x64xf32>, vector<8x64xf32> -> vector<8x64xf32>
    %7 = arith.addf %3, %6 : vector<8x64xf32>
    %c0_6 = arith.constant 0 : index
    %c0_7 = arith.constant 0 : index
    %8 = vector.load %arg11[%c0_6, %c0_7] : memref<8x64xf32, #tpu.memory_space<vmem>>, vector<8x64xf32>
    tpu.vector_store %arg11[%c0_6, %c0_7], %7 {strides = array<i32>} : memref<8x64xf32, #tpu.memory_space<vmem>>, vector<8x64xf32>,
    %c3_i32 = arith.constant 3 : i32
    %9 = arith.cmpi eq, %arg0, %c3_i32 : i32
    %10 = arith.extui %9 : i1 to i32
    %c0_i32_8 = arith.constant 0 : i32
    %11 = arith.cmpi ne, %10, %c0_i32_8 : i32
    scf.if %11 {
      %c0_9 = arith.constant 0 : index
      %c0_10 = arith.constant 0 : index
      %12 = vector.load %arg11[%c0_9, %c0_10] : memref<8x64xf32, #tpu.memory_space<vmem>>, vector<8x64xf32>
      %c0_11 = arith.constant 0 : index
      %c0_12 = arith.constant 0 : index
      %13 = vector.load %arg3[%c0_11, %c0_12] : memref<1x64xf32, #tpu.memory_space<vmem>>, vector<1x64xf32>
      %14 = vector.broadcast %13 : vector<1x64xf32> to vector<8x64xf32>
      %15 = arith.addf %12, %14 : vector<8x64xf32>
      %cst_13 = arith.constant 0.000000e+00 : f32
      %16 = vector.broadcast %cst_13 : f32 to vector<8x64xf32>
      %17 = arith.maximumf %15, %16 : vector<8x64xf32>
      %c0_14 = arith.constant 0 : index
      %c0_15 = arith.constant 0 : index
      %18 = vector.load %arg4[%c0_14, %c0_15] : memref<64x64xf32, #tpu.memory_space<vmem>>, vector<64x64xf32>
      %cst_16 = arith.constant dense<0.000000e+00> : vector<8x64xf32>
      %19 = tpu.matmul %17, %18, %cst_16 {dimension_numbers = #tpu.dot_dimension_numbers<[1], [0], [0], [1], [0, 0, 1, 1], [], []>} : vector<8x64xf32>, vector<64x64xf32>, vector<8x64xf32> -> vector<8x64xf32>
      %c0_17 = arith.constant 0 : index
      %c0_18 = arith.constant 0 : index
      %20 = vector.load %arg5[%c0_17, %c0_18] : memref<1x64xf32, #tpu.memory_space<vmem>>, vector<1x64xf32>
      %21 = vector.broadcast %20 : vector<1x64xf32> to vector<8x64xf32>
      %22 = arith.addf %19, %21 : vector<8x64xf32>
      %cst_19 = arith.constant 0.000000e+00 : f32
      %23 = vector.broadcast %cst_19 : f32 to vector<8x64xf32>
      %24 = arith.maximumf %22, %23 : vector<8x64xf32>
      %c0_20 = arith.constant 0 : index
      %c0_21 = arith.constant 0 : index
      %25 = vector.load %arg6[%c0_20, %c0_21] : memref<64x2xf32, #tpu.memory_space<vmem>>, vector<64x2xf32>
      %cst_22 = arith.constant dense<0.000000e+00> : vector<8x2xf32>
      %26 = tpu.matmul %24, %25, %cst_22 {dimension_numbers = #tpu.dot_dimension_numbers<[1], [0], [0], [1], [0, 0, 1, 1], [], []>} : vector<8x64xf32>, vector<64x2xf32>, vector<8x2xf32> -> vector<8x2xf32>
      %c0_23 = arith.constant 0 : index
      %c0_24 = arith.constant 0 : index
      %27 = vector.load %arg7[%c0_23, %c0_24] : memref<1x2xf32, #tpu.memory_space<vmem>>, vector<1x2xf32>
      %28 = vector.broadcast %27 : vector<1x2xf32> to vector<8x2xf32>
      %29 = arith.addf %26, %28 : vector<8x2xf32>
      %cst_25 = arith.constant 0.000000e+00 : f32
      %30 = vector.broadcast %cst_25 : f32 to vector<8x2xf32>
      %31 = arith.maximumf %29, %30 : vector<8x2xf32>
      %c0_26 = arith.constant 0 : index
      %c0_27 = arith.constant 0 : index
      %32 = vector.load %arg8[%c0_26, %c0_27] : memref<2x2xf32, #tpu.memory_space<vmem>>, vector<2x2xf32>
      %cst_28 = arith.constant dense<0.000000e+00> : vector<8x2xf32>
      %33 = tpu.matmul %31, %32, %cst_28 {dimension_numbers = #tpu.dot_dimension_numbers<[1], [0], [0], [1], [0, 0, 1, 1], [], []>} : vector<8x2xf32>, vector<2x2xf32>, vector<8x2xf32> -> vector<8x2xf32>
      %c0_29 = arith.constant 0 : index
      %c0_30 = arith.constant 0 : index
      %34 = vector.load %arg9[%c0_29, %c0_30] : memref<1x2xf32, #tpu.memory_space<vmem>>, vector<1x2xf32>
      %35 = vector.broadcast %34 : vector<1x2xf32> to vector<8x2xf32>
      %36 = arith.addf %33, %35 : vector<8x2xf32>
      %c0_31 = arith.constant 0 : index
      %c0_32 = arith.constant 0 : index
      %37 = vector.load %arg10[%c0_31, %c0_32] : memref<8x2xf32, #tpu.memory_space<vmem>>, vector<8x2xf32>
      tpu.vector_store %arg10[%c0_31, %c0_32], %36 {strides = array<i32>} : memref<8x2xf32, #tpu.memory_space<vmem>>, vector<8x2xf32>,
    } else {
    }
    return
  }
  func.func @transform_0(%arg0: i32) -> (i32, i32) {
    %c0_i32 = arith.constant 0 : i32
    %c0_i32_0 = arith.constant 0 : i32
    return %c0_i32, %arg0 : i32, i32
  }
  func.func @transform_1(%arg0: i32) -> (i32, i32) {
    %c0_i32 = arith.constant 0 : i32
    %c0_i32_0 = arith.constant 0 : i32
    return %arg0, %c0_i32 : i32, i32
  }
  func.func @transform_2(%arg0: i32) -> (i32, i32) {
    %c0_i32 = arith.constant 0 : i32
    %c0_i32_0 = arith.constant 0 : i32
    %c0_i32_1 = arith.constant 0 : i32
    return %c0_i32, %c0_i32_0 : i32, i32
  }
  func.func @transform_3(%arg0: i32) -> (i32, i32) {
    %c0_i32 = arith.constant 0 : i32
    %c0_i32_0 = arith.constant 0 : i32
    %c0_i32_1 = arith.constant 0 : i32
    return %c0_i32, %c0_i32_0 : i32, i32
  }
  func.func @transform_4(%arg0: i32) -> (i32, i32) {
    %c0_i32 = arith.constant 0 : i32
    %c0_i32_0 = arith.constant 0 : i32
    %c0_i32_1 = arith.constant 0 : i32
    return %c0_i32, %c0_i32_0 : i32, i32
  }
  func.func @transform_5(%arg0: i32) -> (i32, i32) {
    %c0_i32 = arith.constant 0 : i32
    %c0_i32_0 = arith.constant 0 : i32
    %c0_i32_1 = arith.constant 0 : i32
    return %c0_i32, %c0_i32_0 : i32, i32
  }
  func.func @transform_6(%arg0: i32) -> (i32, i32) {
    %c0_i32 = arith.constant 0 : i32
    %c0_i32_0 = arith.constant 0 : i32
    %c0_i32_1 = arith.constant 0 : i32
    return %c0_i32, %c0_i32_0 : i32, i32
  }
  func.func @transform_7(%arg0: i32) -> (i32, i32) {
    %c0_i32 = arith.constant 0 : i32
    %c0_i32_0 = arith.constant 0 : i32
    %c0_i32_1 = arith.constant 0 : i32
    return %c0_i32, %c0_i32_0 : i32, i32
  }
  func.func @transform_8(%arg0: i32) -> (i32, i32) {
    %c0_i32 = arith.constant 0 : i32
    %c0_i32_0 = arith.constant 0 : i32
    %c0_i32_1 = arith.constant 0 : i32
    return %c0_i32, %c0_i32_0 : i32, i32
  }
  func.func @transform_9(%arg0: i32) -> (i32, i32) {
    %c0_i32 = arith.constant 0 : i32
    %c0_i32_0 = arith.constant 0 : i32
    %c0_i32_1 = arith.constant 0 : i32
    return %c0_i32, %c0_i32_0 : i32, i32
  }
}

</mosaic_0001>

<bundles_post_ra>
// kernel: tpu_custom_call.1
= control target key start
LH: loop header
LB: loop body
LE: loop exit
PB: predicated region body
PF: predicated region fallthrough
CT: control target
= control target key end

     0   :  { %s1536_s30 = smov 0   ;;  %s1771_s0 = inlined_call_operand.vmem [shape: f32[8,4096], index: 0, kind: input, shape index: {}]   ;;  %s1772_s1 = inlined_call_operand.vmem [shape: f32[4096,64], index: 1, kind: input, shape index: {}]   ;;  %s1773_s2 = inlined_call_operand.vmem [shape: f32[1,64], index: 2, kind: input, shape index: {}]   ;;  %s1774_s3 = inlined_call_operand.vmem [shape: f32[64,64], index: 3, kind: input, shape index: {}]   ;;  %s1775_s4 = inlined_call_operand.vmem [shape: f32[1,64], index: 4, kind: input, shape index: {}]   ;;  %s1776_s5 = inlined_call_operand.vmem [shape: f32[64,2], index: 5, kind: input, shape index: {}]   ;;  %s1777_s6 = inlined_call_operand.vmem [shape: f32[1,2], index: 6, kind: input, shape index: {}]   ;;  %s1778_s7 = inlined_call_operand.vmem [shape: f32[2,2], index: 7, kind: input, shape index: {}]   ;;  %s1779_s8 = inlined_call_operand.vmem [shape: f32[1,2], index: 8, kind: input, shape index: {}]   ;;  %s1780_s9 = inlined_call_operand.vmem [shape: f32[8,2], index: 9, kind: output, shape index: {}]  }
   0x1 LB: > { %s1542_s10 = sadd.s32 4294967295, %s1480_s30   ;;  %p1090_p0 = scmp.ge.s32.totalorder %s1480_s30, 1  ;;  %s1480_s30 = sphi %s1536_s30, %s19_s30  }
   0x2   : > { %p294_p1 = scmp.lt.s32.totalorder %s1480_s30, 5 }
   0x4   : > { %p295_p2 = pnand %p1090_p0, %p294_p1 }
   0x5   : > { %s1091_s11 = sshll.u32 (!%p295_p2), %s1542_s10, 3  ;;  %s1093_s12 = sshll.u32 (!%p295_p2), %s1542_s10, 7 }
   0x6   : > { %298 = sbr.rel (%p295_p2) target bundleno = 971 (0x3cb), region = 56  ;;  %p331_p3 = scmp.lt.s32.totalorder (!%p295_p2), %s1091_s11, 31 }
   0x7   : > { %p337_p4 = scmp.lt.s32.totalorder (!%p295_p2), %s1093_s12, 511  ;;  %p1095_p5 = scmp.ne.s32.totalorder (!%p295_p2), %s1542_s10, 0 }
   0xd   : > { %s1782_s11 = smov (!%p331_p3, %s1091_s11), 31  ;;  %s1784_s12 = smov (!%p337_p4, %s1093_s12), 511 }
   0xe   : > { %s1092_s13 = sshll.u32 %s1782_s11, 3  ;;  %s1094_s17 = sshll.u32 %s1784_s12, 3  ;;  %vm346_vm0 = vcmask (!%p1095_p5), 523264   ;;  %v1482_v0 = vmov (!%p1095_p5), 0.0  }
   0xf   : > { %s1551_s16 = scalar_lea.vmem %s1771_s0, %s1092_s13  ;;  %s1556_s20 = scalar_lea.vmem %s1772_s1, %s1094_s17  ;;  %347 = vst.msk [vmem:[#allocation2] sm:$0xff] (!%p1095_p5), %vm346_vm0, %v1482_v0 }
  0x10   : > { %345 = sbr.rel (%p1095_p5) target bundleno = 23 (0x17), region = 60 }
  0x17 PF: > { %v373_v1 = vld [vmem:[%s1556_s20 + $0x80] sm:$0xff]  ;;  %v374_v2 = vld [vmem:[%s1556_s20 + $0x88] sm:$0xff]  ;;  %v375_v12 = vld [vmem:[%s1556_s20 + $0x90] sm:$0xff]  ;;  %vm766_vm1 = vcmask 523264   ;;  %p1096_p6 = scmp.ne.s32.totalorder %s1542_s10, 3 }
  0x18   : > { %v405_v3 = vld [vmem:[%s1556_s20 + $0x180] sm:$0xff]  ;;  %v1310_v4 = vpack.c.bf16 %v374_v2, %v373_v1  ;;  %v406_v5 = vld [vmem:[%s1556_s20 + $0x188] sm:$0xff]  ;;  %v376_v14 = vld [vmem:[%s1556_s20 + $0x98] sm:$0xff]  ;;  %vm1484_vm2 = vmmov (!%p1096_p6), 0   ;;  %vm972_vm3 = vcmask (!%p1096_p6), 1041408   ;;  %vm968_vm4 = vcmask (!%p1096_p6), 15360  }
  0x19   : > { %v357_v6 = vld [vmem:[%s1556_s20] sm:$0xff]  ;;  %v358_v7 = vld [vmem:[%s1556_s20 + $0x8] sm:$0xff]  ;;  %v1342_v8 = vpack.c.bf16 %v406_v5, %v405_v3  ;;  %v407_v15 = vld [vmem:[%s1556_s20 + $0x190] sm:$0xff]  ;;  %v1314_v17 = vpack.c.bf16 %v376_v14, %v375_v12 }
  0x1a   : > { %v1312_v9 = vpack.c.bf16 %v358_v7, %v357_v6  ;;  %v389_v10 = vld [vmem:[%s1556_s20 + $0x100] sm:$0xff]  ;;  %v390_v11 = vld [vmem:[%s1556_s20 + $0x108] sm:$0xff]  ;;  %1311 = vmatprep.subr.bf16.mxu0 %v1310_v4  ;;  %v408_v16 = vld [vmem:[%s1556_s20 + $0x198] sm:$0xff] }
  0x1b   : > { %v1344_v13 = vpack.c.bf16 %v390_v11, %v389_v10  ;;  %1343 = vmatprep.subr.bf16.mxu1 %v1342_v8  ;;  %v1346_v18 = vpack.c.bf16 %v408_v16, %v407_v15  ;;  %v359_v19 = vld [vmem:[%s1556_s20 + $0x10] sm:$0xff]  ;;  %v360_v20 = vld [vmem:[%s1556_s20 + $0x18] sm:$0xff]  ;;  %v377_v24 = vld [vmem:[%s1556_s20 + $0xa0] sm:$0xff] }
  0x1c   : > { %1313 = vmatpush3.bf16.msra.mxu0 %v1312_v9  ;;  %v391_v21 = vld [vmem:[%s1556_s20 + $0x110] sm:$0xff]  ;;  %v1316_v22 = vpack.c.bf16 %v360_v20, %v359_v19  ;;  %v392_v23 = vld [vmem:[%s1556_s20 + $0x118] sm:$0xff]  ;;  %v378_v25 = vld [vmem:[%s1556_s20 + $0xa8] sm:$0xff] }
  0x1d   : > { %1345 = vmatpush3.bf16.msra.mxu1 %v1344_v13  ;;  %1315 = vmatprep.subr.bf16.mxu0 %v1314_v17  ;;  %v1348_v26 = vpack.c.bf16 %v392_v23, %v391_v21  ;;  %v1318_v27 = vpack.c.bf16 %v378_v25, %v377_v24  ;;  %v409_v28 = vld [vmem:[%s1556_s20 + $0x1a0] sm:$0xff]  ;;  %v410_v29 = vld [vmem:[%s1556_s20 + $0x1a8] sm:$0xff]  ;;  %v379_v36 = vld [vmem:[%s1556_s20 + $0xb0] sm:$0xff] }
  0x1e   : > { %1347 = vmatprep.subr.bf16.mxu1 %v1346_v18  ;;  %v361_v30 = vld [vmem:[%s1556_s20 + $0x20] sm:$0xff]  ;;  %v1350_v31 = vpack.c.bf16 %v410_v29, %v409_v28  ;;  %v362_v32 = vld [vmem:[%s1556_s20 + $0x28] sm:$0xff]  ;;  %v380_v37 = vld [vmem:[%s1556_s20 + $0xb8] sm:$0xff] }
  0x1f   : > { %v393_v33 = vld [vmem:[%s1556_s20 + $0x120] sm:$0xff]  ;;  %v394_v34 = vld [vmem:[%s1556_s20 + $0x128] sm:$0xff]  ;;  %v1320_v35 = vpack.c.bf16 %v362_v32, %v361_v30  ;;  %v411_v38 = vld [vmem:[%s1556_s20 + $0x1b0] sm:$0xff]  ;;  %v1322_v40 = vpack.c.bf16 %v380_v37, %v379_v36 }
  0x20   : > { %1317 = vmatpush3.bf16.msra.mxu0 %v1316_v22  ;;  %v1352_v39 = vpack.c.bf16 %v394_v34, %v393_v33  ;;  %v412_v41 = vld [vmem:[%s1556_s20 + $0x1b8] sm:$0xff]  ;;  %v363_v42 = vld [vmem:[%s1556_s20 + $0x30] sm:$0xff]  ;;  %v381_v47 = vld [vmem:[%s1556_s20 + $0xc0] sm:$0xff] }
  0x21   : > { %1349 = vmatpush3.bf16.msra.mxu1 %v1348_v26  ;;  %1319 = vmatprep.subr.bf16.mxu0 %v1318_v27  ;;  %v364_v43 = vld [vmem:[%s1556_s20 + $0x38] sm:$0xff]  ;;  %v1354_v44 = vpack.c.bf16 %v412_v41, %v411_v38  ;;  %v395_v45 = vld [vmem:[%s1556_s20 + $0x130] sm:$0xff]  ;;  %v382_v48 = vld [vmem:[%s1556_s20 + $0xc8] sm:$0xff] }
  0x22   : > { %1351 = vmatprep.subr.bf16.mxu1 %v1350_v31  ;;  %v396_v46 = vld [vmem:[%s1556_s20 + $0x138] sm:$0xff]  ;;  %v413_v49 = vld [vmem:[%s1556_s20 + $0x1c0] sm:$0xff]  ;;  %v414_v50 = vld [vmem:[%s1556_s20 + $0x1c8] sm:$0xff]  ;;  %v1324_v51 = vpack.c.bf16 %v364_v43, %v363_v42  ;;  %v1326_v53 = vpack.c.bf16 %v382_v48, %v381_v47 }
  0x23   : > { %v1356_v52 = vpack.c.bf16 %v396_v46, %v395_v45  ;;  %v365_v54 = vld [vmem:[%s1556_s20 + $0x40] sm:$0xff]  ;;  %v366_v55 = vld [vmem:[%s1556_s20 + $0x48] sm:$0xff]  ;;  %v1358_v57 = vpack.c.bf16 %v414_v50, %v413_v49  ;;  %v383_v59 = vld [vmem:[%s1556_s20 + $0xd0] sm:$0xff] }
  0x24   : > { %1321 = vmatpush3.bf16.msra.mxu0 %v1320_v35  ;;  %v397_v56 = vld [vmem:[%s1556_s20 + $0x140] sm:$0xff]  ;;  %v398_v58 = vld [vmem:[%s1556_s20 + $0x148] sm:$0xff]  ;;  %v384_v60 = vld [vmem:[%s1556_s20 + $0xd8] sm:$0xff]  ;;  %v1328_v63 = vpack.c.bf16 %v366_v55, %v365_v54 }
  0x25   : > { %1353 = vmatpush3.bf16.msra.mxu1 %v1352_v39  ;;  %1323 = vmatprep.subr.bf16.mxu0 %v1322_v40  ;;  %v415_v61 = vld [vmem:[%s1556_s20 + $0x1d0] sm:$0xff]  ;;  %v416_v62 = vld [vmem:[%s1556_s20 + $0x1d8] sm:$0xff]  ;;  %v1360_v0 = vpack.c.bf16 %v398_v58, %v397_v56  ;;  %v1330_v1 = vpack.c.bf16 %v384_v60, %v383_v59  ;;  %v385_v7 = vld [vmem:[%s1556_s20 + $0xe0] sm:$0xff] }
  0x26   : > { %1355 = vmatprep.subr.bf16.mxu1 %v1354_v44  ;;  %v367_v2 = vld [vmem:[%s1556_s20 + $0x50] sm:$0xff]  ;;  %v368_v3 = vld [vmem:[%s1556_s20 + $0x58] sm:$0xff]  ;;  %v1362_v5 = vpack.c.bf16 %v416_v62, %v415_v61  ;;  %v386_v8 = vld [vmem:[%s1556_s20 + $0xe8] sm:$0xff] }
  0x27   : > { %v399_v4 = vld [vmem:[%s1556_s20 + $0x150] sm:$0xff]  ;;  %v400_v6 = vld [vmem:[%s1556_s20 + $0x158] sm:$0xff]  ;;  %v417_v9 = vld [vmem:[%s1556_s20 + $0x1e0] sm:$0xff]  ;;  %v1332_v11 = vpack.c.bf16 %v368_v3, %v367_v2  ;;  %v1334_v15 = vpack.c.bf16 %v386_v8, %v385_v7 }
  0x28   : > { %1325 = vmatpush3.bf16.msra.mxu0 %v1324_v51  ;;  %v418_v10 = vld [vmem:[%s1556_s20 + $0x1e8] sm:$0xff]  ;;  %v369_v12 = vld [vmem:[%s1556_s20 + $0x60] sm:$0xff]  ;;  %v1364_v14 = vpack.c.bf16 %v400_v6, %v399_v4  ;;  %v352_v18 = vld [vmem:[%s1551_s16 + $0x18] sm:$0xff] }
  0x29   : > { %1357 = vmatpush3.bf16.msra.mxu1 %v1356_v52  ;;  %1327 = vmatprep.subr.bf16.mxu0 %v1326_v53  ;;  %v370_v13 = vld [vmem:[%s1556_s20 + $0x68] sm:$0xff]  ;;  %v401_v16 = vld [vmem:[%s1556_s20 + $0x160] sm:$0xff]  ;;  %v1366_v19 = vpack.c.bf16 %v418_v10, %v417_v9  ;;  %v387_v21 = vld [vmem:[%s1556_s20 + $0xf0] sm:$0xff] }
  0x2a   : > { %1359 = vmatprep.subr.bf16.mxu1 %v1358_v57  ;;  %v350_v17 = vld [vmem:[%s1551_s16 + $0x8] sm:$0xff]  ;;  %v388_v22 = vld [vmem:[%s1556_s20 + $0xf8] sm:$0xff]  ;;  %v419_v23 = vld [vmem:[%s1556_s20 + $0x1f0] sm:$0xff]  ;;  %619 = vmatprep.mubr.f32.mxu1 %v352_v18  ;;  %v1336_v25 = vpack.c.bf16 %v370_v13, %v369_v12 }
  0x2b   : > { %v402_v20 = vld [vmem:[%s1556_s20 + $0x168] sm:$0xff]  ;;  %549 = vmatprep.mubr.f32.mxu0 %v350_v17  ;;  %v420_v24 = vld [vmem:[%s1556_s20 + $0x1f8] sm:$0xff]  ;;  %v1338_v27 = vpack.c.bf16 %v388_v22, %v387_v21  ;;  %v371_v28 = vld [vmem:[%s1556_s20 + $0x70] sm:$0xff] }
  0x2c   : > { %1329 = vmatpush3.bf16.msra.mxu0 %v1328_v63  ;;  %v1368_v26 = vpack.c.bf16 %v402_v20, %v401_v16  ;;  %v372_v29 = vld [vmem:[%s1556_s20 + $0x78] sm:$0xff]  ;;  %v403_v30 = vld [vmem:[%s1556_s20 + $0x170] sm:$0xff]  ;;  %v1370_v31 = vpack.c.bf16 %v420_v24, %v419_v23  ;;  %v437_v33 = vld [vmem:[%s1556_s20 + $0x280] sm:$0xff] }
  0x2d   : > { %1361 = vmatpush3.bf16.msra.mxu1 %v1360_v0  ;;  %1331 = vmatprep.subr.bf16.mxu0 %v1330_v1  ;;  %v404_v32 = vld [vmem:[%s1556_s20 + $0x178] sm:$0xff]  ;;  %v438_v34 = vld [vmem:[%s1556_s20 + $0x288] sm:$0xff]  ;;  %v469_v35 = vld [vmem:[%s1556_s20 + $0x380] sm:$0xff]  ;;  %v1340_v37 = vpack.c.bf16 %v372_v29, %v371_v28 }
  0x2e   : > { %1363 = vmatprep.subr.bf16.mxu1 %v1362_v5  ;;  %v470_v36 = vld [vmem:[%s1556_s20 + $0x388] sm:$0xff]  ;;  %v1372_v38 = vpack.c.bf16 %v404_v32, %v403_v30  ;;  %v1374_v39 = vpack.c.bf16 %v438_v34, %v437_v33  ;;  %v421_v40 = vld [vmem:[%s1556_s20 + $0x200] sm:$0xff]  ;;  %v439_v45 = vld [vmem:[%s1556_s20 + $0x290] sm:$0xff] }
  0x2f   : > { %v422_v41 = vld [vmem:[%s1556_s20 + $0x208] sm:$0xff]  ;;  %v453_v42 = vld [vmem:[%s1556_s20 + $0x300] sm:$0xff]  ;;  %v1406_v43 = vpack.c.bf16 %v470_v36, %v469_v35  ;;  %v440_v46 = vld [vmem:[%s1556_s20 + $0x298] sm:$0xff] }
  0x30   : > { %1333 = vmatpush3.bf16.msra.mxu0 %v1332_v11  ;;  %v454_v44 = vld [vmem:[%s1556_s20 + $0x308] sm:$0xff]  ;;  %v471_v47 = vld [vmem:[%s1556_s20 + $0x390] sm:$0xff]  ;;  %v472_v48 = vld [vmem:[%s1556_s20 + $0x398] sm:$0xff]  ;;  %v1376_v51 = vpack.c.bf16 %v422_v41, %v421_v40  ;;  %v1378_v53 = vpack.c.bf16 %v440_v46, %v439_v45 }
  0x31   : > { %1365 = vmatpush3.bf16.msra.mxu1 %v1364_v14  ;;  %1335 = vmatprep.subr.bf16.mxu0 %v1334_v15  ;;  %v349_v49 = vld [vmem:[%s1551_s16] sm:$0xff]  ;;  %v351_v50 = vld [vmem:[%s1551_s16 + $0x10] sm:$0xff]  ;;  %v1408_v52 = vpack.c.bf16 %v454_v44, %v453_v42  ;;  %v424_v55 = vld [vmem:[%s1556_s20 + $0x218] sm:$0xff]  ;;  %v1410_v57 = vpack.c.bf16 %v472_v48, %v471_v47 }
  0x32   : > { %1367 = vmatprep.subr.bf16.mxu1 %v1366_v19  ;;  %v423_v54 = vld [vmem:[%s1556_s20 + $0x210] sm:$0xff]  ;;  %v456_v58 = vld [vmem:[%s1556_s20 + $0x318] sm:$0xff]  ;;  %v441_v59 = vld [vmem:[%s1556_s20 + $0x2a0] sm:$0xff] }
  0x33   : > { %v455_v56 = vld [vmem:[%s1556_s20 + $0x310] sm:$0xff]  ;;  %v442_v60 = vld [vmem:[%s1556_s20 + $0x2a8] sm:$0xff]  ;;  %v473_v61 = vld [vmem:[%s1556_s20 + $0x3a0] sm:$0xff]  ;;  %v1380_v63 = vpack.c.bf16 %v424_v55, %v423_v54 }
  0x34   : > { %1337 = vmatpush3.bf16.msra.mxu0 %v1336_v25  ;;  %v474_v62 = vld [vmem:[%s1556_s20 + $0x3a8] sm:$0xff]  ;;  %v1412_v0 = vpack.c.bf16 %v456_v58, %v455_v56  ;;  %v1382_v1 = vpack.c.bf16 %v442_v60, %v441_v59  ;;  %v425_v2 = vld [vmem:[%s1556_s20 + $0x220] sm:$0xff]  ;;  %v443_v7 = vld [vmem:[%s1556_s20 + $0x2b0] sm:$0xff] }
  0x35   : > { %1369 = vmatpush3.bf16.msra.mxu1 %v1368_v26  ;;  %1339 = vmatprep.subr.bf16.mxu0 %v1338_v27  ;;  %v426_v3 = vld [vmem:[%s1556_s20 + $0x228] sm:$0xff]  ;;  %v457_v4 = vld [vmem:[%s1556_s20 + $0x320] sm:$0xff]  ;;  %v1414_v5 = vpack.c.bf16 %v474_v62, %v473_v61  ;;  %v444_v8 = vld [vmem:[%s1556_s20 + $0x2b8] sm:$0xff] }
  0x36   : > { %1371 = vmatprep.subr.bf16.mxu1 %v1370_v31  ;;  %v458_v6 = vld [vmem:[%s1556_s20 + $0x328] sm:$0xff]  ;;  %v475_v9 = vld [vmem:[%s1556_s20 + $0x3b0] sm:$0xff]  ;;  %v476_v10 = vld [vmem:[%s1556_s20 + $0x3b8] sm:$0xff]  ;;  %v1384_v11 = vpack.c.bf16 %v426_v3, %v425_v2  ;;  %v1386_v13 = vpack.c.bf16 %v444_v8, %v443_v7 }
  0x37   : > { %v1416_v12 = vpack.c.bf16 %v458_v6, %v457_v4  ;;  %v427_v14 = vld [vmem:[%s1556_s20 + $0x230] sm:$0xff]  ;;  %v428_v15 = vld [vmem:[%s1556_s20 + $0x238] sm:$0xff]  ;;  %v1418_v17 = vpack.c.bf16 %v476_v10, %v475_v9  ;;  %v445_v19 = vld [vmem:[%s1556_s20 + $0x2c0] sm:$0xff] }
  0x38   : > { %1341 = vmatpush3.bf16.msra.mxu0 %v1340_v37  ;;  %v459_v16 = vld [vmem:[%s1556_s20 + $0x330] sm:$0xff]  ;;  %v460_v18 = vld [vmem:[%s1556_s20 + $0x338] sm:$0xff]  ;;  %v446_v20 = vld [vmem:[%s1556_s20 + $0x2c8] sm:$0xff]  ;;  %v1388_v23 = vpack.c.bf16 %v428_v15, %v427_v14 }
  0x39   : > { %1373 = vmatpush3.bf16.msra.mxu1 %v1372_v38  ;;  %1375 = vmatprep.subr.bf16.mxu0 %v1374_v39  ;;  %v477_v21 = vld [vmem:[%s1556_s20 + $0x3c0] sm:$0xff]  ;;  %v478_v22 = vld [vmem:[%s1556_s20 + $0x3c8] sm:$0xff]  ;;  %v356_v25 = vld [vmem:[%s1551_s16 + $0x38] sm:$0xff]  ;;  %v1420_v26 = vpack.c.bf16 %v460_v18, %v459_v16  ;;  %v1390_v27 = vpack.c.bf16 %v446_v20, %v445_v19 }
  0x3a   : > { %1407 = vmatprep.subr.bf16.mxu1 %v1406_v43  ;;  %v354_v24 = vld [vmem:[%s1551_s16 + $0x28] sm:$0xff]  ;;  %v429_v28 = vld [vmem:[%s1556_s20 + $0x240] sm:$0xff]  ;;  %v1422_v31 = vpack.c.bf16 %v478_v22, %v477_v21  ;;  %v447_v33 = vld [vmem:[%s1556_s20 + $0x2d0] sm:$0xff] }
  0x3b   : > { %550 = vmatmul.mubr.f32.vlgmr.msra.gmra.mrb[0].mxu0 %v349_v49  ;;  %v430_v29 = vld [vmem:[%s1556_s20 + $0x248] sm:$0xff]  ;;  %v461_v30 = vld [vmem:[%s1556_s20 + $0x340] sm:$0xff]  ;;  %v448_v34 = vld [vmem:[%s1556_s20 + $0x2d8] sm:$0xff] }
  0x3c   : > { %620 = vmatmul.mubr.f32.vlgmr.msra.gmra.mrb[0].mxu1 %v351_v50  ;;  %1377 = vmatpush3.bf16.msra.mxu0 %v1376_v51  ;;  %v462_v32 = vld [vmem:[%s1556_s20 + $0x348] sm:$0xff]  ;;  %v479_v35 = vld [vmem:[%s1556_s20 + $0x3d0] sm:$0xff]  ;;  %v480_v36 = vld [vmem:[%s1556_s20 + $0x3d8] sm:$0xff]  ;;  %v1392_v37 = vpack.c.bf16 %v430_v29, %v429_v28  ;;  %v1394_v39 = vpack.c.bf16 %v448_v34, %v447_v33  ;;  %v1483_v29 = vmov (!%p1096_p6), 0.0|0.0  }
  0x3d   : > { %1409 = vmatpush3.bf16.msra.mxu1 %v1408_v52  ;;  %1379 = vmatprep.subr.bf16.mxu0 %v1378_v53  ;;  %v1424_v38 = vpack.c.bf16 %v462_v32, %v461_v30  ;;  %v431_v40 = vld [vmem:[%s1556_s20 + $0x250] sm:$0xff]  ;;  %v432_v41 = vld [vmem:[%s1556_s20 + $0x258] sm:$0xff]  ;;  %v1426_v43 = vpack.c.bf16 %v480_v36, %v479_v35  ;;  %v449_v45 = vld [vmem:[%s1556_s20 + $0x2e0] sm:$0xff]  ;;  %v1485_v32 = vmov (!%p1096_p6), 0.0  }
  0x3e   : > { %1411 = vmatprep.subr.bf16.mxu1 %v1410_v57  ;;  %689 = vmatprep.mubr.f32.mxu0 %v354_v24  ;;  %v463_v42 = vld [vmem:[%s1556_s20 + $0x350] sm:$0xff]  ;;  %v464_v44 = vld [vmem:[%s1556_s20 + $0x358] sm:$0xff]  ;;  %v450_v46 = vld [vmem:[%s1556_s20 + $0x2e8] sm:$0xff]  ;;  %v1396_v49 = vpack.c.bf16 %v432_v41, %v431_v40 }
  0x3f   : > { %759 = vmatprep.mubr.f32.mxu1 %v356_v25  ;;  %v481_v47 = vld [vmem:[%s1556_s20 + $0x3e0] sm:$0xff]  ;;  %v482_v48 = vld [vmem:[%s1556_s20 + $0x3e8] sm:$0xff]  ;;  %v1428_v50 = vpack.c.bf16 %v464_v44, %v463_v42  ;;  %v1398_v51 = vpack.c.bf16 %v450_v46, %v449_v45  ;;  %v451_v57 = vld [vmem:[%s1556_s20 + $0x2f0] sm:$0xff] }
  0x40   : > { %1381 = vmatpush3.bf16.msra.mxu0 %v1380_v63  ;;  %v433_v52 = vld [vmem:[%s1556_s20 + $0x260] sm:$0xff]  ;;  %v434_v53 = vld [vmem:[%s1556_s20 + $0x268] sm:$0xff]  ;;  %v1430_v55 = vpack.c.bf16 %v482_v48, %v481_v47  ;;  %v452_v58 = vld [vmem:[%s1556_s20 + $0x2f8] sm:$0xff] }
  0x41   : > { %1413 = vmatpush3.bf16.msra.mxu1 %v1412_v0  ;;  %1383 = vmatprep.subr.bf16.mxu0 %v1382_v1  ;;  %v465_v54 = vld [vmem:[%s1556_s20 + $0x360] sm:$0xff]  ;;  %v466_v56 = vld [vmem:[%s1556_s20 + $0x368] sm:$0xff]  ;;  %v483_v59 = vld [vmem:[%s1556_s20 + $0x3f0] sm:$0xff]  ;;  %v1400_v61 = vpack.c.bf16 %v434_v53, %v433_v52  ;;  %v1402_v63 = vpack.c.bf16 %v452_v58, %v451_v57 }
  0x42   : > { %1415 = vmatprep.subr.bf16.mxu1 %v1414_v5  ;;  %v484_v60 = vld [vmem:[%s1556_s20 + $0x3f8] sm:$0xff]  ;;  %v1432_v62 = vpack.c.bf16 %v466_v56, %v465_v54  ;;  %v435_v0 = vld [vmem:[%s1556_s20 + $0x270] sm:$0xff]  ;;  %v353_v7 = vld [vmem:[%s1551_s16 + $0x20] sm:$0xff] }
  0x43   : > { %v436_v1 = vld [vmem:[%s1556_s20 + $0x278] sm:$0xff]  ;;  %v1434_v2 = vpack.c.bf16 %v484_v60, %v483_v59  ;;  %v467_v3 = vld [vmem:[%s1556_s20 + $0x370] sm:$0xff]  ;;  %v786_v34 = vld [vmem:[%s1774_s3 + $0x20] sm:$0xff] (!%p1096_p6) }
  0x44   : > { %1385 = vmatpush3.bf16.msra.mxu0 %v1384_v11  ;;  %v468_v4 = vld [vmem:[%s1556_s20 + $0x378] sm:$0xff]  ;;  %v1404_v5 = vpack.c.bf16 %v436_v1, %v435_v0  ;;  %v355_v8 = vld [vmem:[%s1551_s16 + $0x30] sm:$0xff]  ;;  %v871_v35 = vld [vmem:[%s1776_s5] sm:$0xff] (!%p1096_p6) }
  0x45   : > { %1417 = vmatpush3.bf16.msra.mxu1 %v1416_v12  ;;  %1387 = vmatprep.subr.bf16.mxu0 %v1386_v13  ;;  %v1436_v6 = vpack.c.bf16 %v468_v4, %v467_v3  ;;  %v784_v28 = vld [vmem:[%s1774_s3 + $0x10] sm:$0xff] (!%p1096_p6)  ;;  %v872_v36 = vld [vmem:[%s1776_s5 + $0x8] sm:$0xff] (!%p1096_p6)  ;;  %v874_v40 = vld [vmem:[%s1776_s5 + $0x18] sm:$0xff] (!%p1096_p6) }
  0x46   : > { %1419 = vmatprep.subr.bf16.mxu1 %v1418_v17  ;;  %v1097_v44 = vld [vmem:[%s1773_s2] ss:$0 sm:$0xff] (!%p1096_p6)  ;;  %v876_v46 = vld [vmem:[%s1776_s5 + $0x28] sm:$0xff] (!%p1096_p6)  ;;  %v788_v47 = vld [vmem:[%s1774_s3 + $0x30] sm:$0xff] (!%p1096_p6) }
  0x47   : > { %v875_v45 = vld [vmem:[%s1776_s5 + $0x20] sm:$0xff] (!%p1096_p6)  ;;  %v789_v48 = vld [vmem:[%s1774_s3 + $0x38] sm:$0xff] (!%p1096_p6)  ;;  %v877_v53 = vld [vmem:[%s1776_s5 + $0x30] sm:$0xff] (!%p1096_p6) }
  0x48   : > { %1389 = vmatpush3.bf16.msra.mxu0 %v1388_v23  ;;  %v348_v23 = vld [vmem:[#allocation2] sm:$0xff]  ;;  %v878_v54 = vld [vmem:[%s1776_s5 + $0x38] sm:$0xff] (!%p1096_p6) }
  0x49   : > { %1421 = vmatpush3.bf16.msra.mxu1 %v1420_v26  ;;  %1391 = vmatprep.subr.bf16.mxu0 %v1390_v27  ;;  %v782_v26 = vld [vmem:[%s1774_s3] sm:$0xff] (!%p1096_p6)  ;;  %v783_v27 = vld [vmem:[%s1774_s3 + $0x8] sm:$0xff] (!%p1096_p6) }
  0x4a   : > { %1423 = vmatprep.subr.bf16.mxu1 %v1422_v31  ;;  %v1439_v30 = vpack.c.bf16 (!%p1096_p6), %v783_v27, %v782_v26  ;;  %v785_v31 = vld [vmem:[%s1774_s3 + $0x18] sm:$0xff] (!%p1096_p6)  ;;  %v1098_v56 = vld [vmem:[%s1775_s4] ss:$0 sm:$0xff] (!%p1096_p6) }
  0x4b   : > { %v1442_v33 = vpack.c.bf16 (!%p1096_p6), %v785_v31, %v784_v28  ;;  %v1102_v3 = vld [vmem:[%s1779_s8] ss:$0 sm:$0xff] (!%p1096_p6) }
  0x4c   : > { %1393 = vmatpush3.bf16.msra.mxu0 %v1392_v37  ;;  %v787_v37 = vld [vmem:[%s1774_s3 + $0x28] sm:$0xff] (!%p1096_p6) }
  0x4d   : > { %1425 = vmatpush3.bf16.msra.mxu1 %v1424_v38  ;;  %1395 = vmatprep.subr.bf16.mxu0 %v1394_v39  ;;  %v1451_v38 = vpack.c.bf16 (!%p1096_p6), %v872_v36, %v871_v35  ;;  %v873_v39 = vld [vmem:[%s1776_s5 + $0x10] sm:$0xff] (!%p1096_p6) }
  0x4e   : > { %1427 = vmatprep.subr.bf16.mxu1 %v1426_v43  ;;  %v1454_v42 = vpack.c.bf16 (!%p1096_p6), %v874_v40, %v873_v39  ;;  %v1445_v43 = vpack.c.bf16 (!%p1096_p6), %v787_v37, %v786_v34 }
  0x50   : > { %1397 = vmatpush3.bf16.msra.mxu0 %v1396_v49 }
  0x51   : > { %1429 = vmatpush3.bf16.msra.mxu1 %v1428_v50  ;;  %1399 = vmatprep.subr.bf16.mxu0 %v1398_v51  ;;  %v1457_v50 = vpack.c.bf16 (!%p1096_p6), %v876_v46, %v875_v45  ;;  %v1448_v51 = vpack.c.bf16 (!%p1096_p6), %v789_v48, %v788_v47 }
  0x52   : > { %1431 = vmatprep.subr.bf16.mxu1 %v1430_v55  ;;  %v1460_v55 = vpack.c.bf16 (!%p1096_p6), %v878_v54, %v877_v53 }
  0x54   : > { %1401 = vmatpush3.bf16.msra.mxu0 %v1400_v61  ;;  %v960_v61 = vld [vmem:[%s1778_s7] sm:$0x3] (!%p1096_p6) }
  0x55   : > { %1433 = vmatpush3.bf16.msra.mxu1 %v1432_v62  ;;  %1403 = vmatprep.subr.bf16.mxu0 %v1402_v63  ;;  %v1100_v62 = vld [vmem:[%s1777_s6] ss:$0 sm:$0xff] (!%p1096_p6) }
  0x56   : > { %1435 = vmatprep.subr.bf16.mxu1 %v1434_v2 }
  0x58   : > { %1405 = vmatpush3.bf16.msra.mxu0 %v1404_v5 }
  0x59   : > { %1437 = vmatpush3.bf16.msra.mxu1 %v1436_v6  ;;  %1438 = vmatprep.subr.bf16.mxu0 (!%p1096_p6), %v1483_v29 }
  0x5a   : > { %1450 = vmatprep.subr.bf16.mxu1 (!%p1096_p6), %v1483_v29 }
  0x5b   : > { %690 = vmatmul.mubr.f32.vlgmr.msra.gmra.mrb[2].mxu0 %v353_v7 }
  0x5c   : > { %760 = vmatmul.mubr.f32.vlgmr.msra.gmra.mrb[2].mxu1 %v355_v8  ;;  %1283 = vmatprep.mubr.msk.f32.mxu0 (!%p1096_p6), %vm1484_vm2, %v1485_v32 }
  0x5d   : > { %1302 = vmatprep.mubr.msk.f32.mxu1 (!%p1096_p6), %vm1484_vm2, %v1485_v32  ;;  %1440 = vmatpush3.bf16.msra.mxu0 (!%p1096_p6), %v1439_v30 }
  0x5e   : > { %1441 = vmatprep.subr.bf16.mxu0 (!%p1096_p6), %v1483_v29  ;;  %1452 = vmatpush3.bf16.msra.mxu1 (!%p1096_p6), %v1451_v38 }
  0x5f   : > { %1453 = vmatprep.subr.bf16.mxu1 (!%p1096_p6), %v1483_v29 }
  0x61   : > { %1443 = vmatpush3.bf16.msra.mxu0 (!%p1096_p6), %v1442_v33 }
  0x62   : > { %1444 = vmatprep.subr.bf16.mxu0 (!%p1096_p6), %v1483_v29  ;;  %1455 = vmatpush3.bf16.msra.mxu1 (!%p1096_p6), %v1454_v42 }
  0x63   : > { %1456 = vmatprep.subr.bf16.mxu1 (!%p1096_p6), %v1483_v29 }
  0x65   : > { %1446 = vmatpush3.bf16.msra.mxu0 (!%p1096_p6), %v1445_v43 }
  0x66   : > { %1447 = vmatprep.subr.bf16.mxu0 (!%p1096_p6), %v1483_v29  ;;  %1458 = vmatpush3.bf16.msra.mxu1 (!%p1096_p6), %v1457_v50 }
  0x67   : > { %1459 = vmatprep.subr.bf16.mxu1 (!%p1096_p6), %v1483_v29 }
  0x69   : > { %1449 = vmatpush3.bf16.msra.mxu0 (!%p1096_p6), %v1448_v51 }
  0x6a   : > { %1305 = vmatprep.subr.mxu0 (!%p1096_p6), %v1485_v32  ;;  %1461 = vmatpush3.bf16.msra.mxu1 (!%p1096_p6), %v1460_v55 }
 0x10e   : > { %v1139_v9 = vpop.f32.mrb[0].mxu0 }
 0x10f   : > { %v1174_v10 = vpop.f32.mrb[0].mxu1  ;;  %v1140_v11 = vpop.f32.mrb[1].mxu0 }
 0x110   : > { %v1141_v12 = vadd.f32 %v1140_v11, %v1139_v9  ;;  %v1175_v13 = vpop.f32.mrb[1].mxu1 }
 0x111   : > { %v1176_v14 = vadd.f32 %v1175_v13, %v1174_v10 }
 0x113   : > { %v622_v15 = vadd.f32 %v1176_v14, %v1141_v12 }
 0x12e   : > { %v1209_v16 = vpop.f32.mrb[2].mxu0 }
 0x12f   : > { %v1210_v17 = vpop.f32.mrb[3].mxu0  ;;  %v1244_v18 = vpop.f32.mrb[2].mxu1 }
 0x130   : > { %v1211_v19 = vadd.f32 %v1210_v17, %v1209_v16  ;;  %v1245_v20 = vpop.f32.mrb[3].mxu1 }
 0x131   : > { %v1246_v21 = vadd.f32 %v1245_v20, %v1244_v18 }
 0x132   : > { %v692_v22 = vadd.f32 %v1211_v19, %v622_v15  ;;  %771 = sbr.rel (%p1096_p6) target bundleno = 971 (0x3cb), region = 64 }
 0x134   : > { %v762_v24 = vadd.f32 %v1246_v21, %v692_v22 }
 0x136   : > { %v765_v25 = vadd.f32 %v762_v24, %v348_v23 }
 0x138   : > { %767 = vst.msk [vmem:[#allocation2] sm:$0xff] %vm766_vm1, %v765_v25 }
 0x13f   : > { %v772_v41 = vld [vmem:[#allocation2] sm:$0xff] }
 0x140   : > { %v780_v49 = vadd.f32 %v1097_v44, %v772_v41 }
 0x142   : > { %v781_v52 = vmax.f32 %v780_v49, 0.0 }
 0x144   : > { %1284 = vmatmul.mubr.msk.f32.vlgmr.msra.gmra.mrb[0].mxu0 %vm766_vm1, %v781_v52 }
 0x145   : > { %1307 = vmatprep.mubr.msk.f32.mxu0 %vm1484_vm2, %v1485_v32  ;;  %1306 = vmatpush3.msk.msra.mxu0 %vm972_vm3, %v960_v61 }
 0x217   : > { %v866_v57 = vpop.f32.mrb[0].mxu0 }
 0x218   : > { %v867_v58 = vadd.f32 %v1098_v56, %v866_v57  ;;  %v1285_v59 = vpop.f32.mrb[1].mxu0 }
 0x21a   : > { %v870_v60 = vmax.f32 %v867_v58, 0.0 }
 0x21c   : > { %1303 = vmatmul.mubr.msk.f32.vlgmr.msra.gmra.mrb[0].mxu1 %vm766_vm1, %v870_v60 }
 0x2ef   : > { %v955_v63 = vpop.f32.mrb[0].mxu1 }
 0x2f0   : > { %v956_v0 = vadd.f32 %v1100_v62, %v955_v63  ;;  %v1304_v1 = vpop.f32.mrb[1].mxu1 }
 0x2f2   : > { %v959_v2 = vmax.f32 %v956_v0, 0.0 }
 0x2f4   : > { %1308 = vmatmul.mubr.msk.f32.vlgmr.msra.gmra.mrb[2].mxu0 %vm968_vm4, %v959_v2 }
 0x3c7   : > { %v1042_v4 = vpop.f32.mrb[2].mxu0 }
 0x3c8   : > { %v1043_v5 = vadd.f32 %v1102_v3, %v1042_v4  ;;  %v1309_v6 = vpop.f32.mrb[3].mxu0 }
 0x3ca   : > { %1046 = vst.msk [vmem:[%s1780_s9] sm:$0xff] %vm968_vm4, %v1043_v5 }
 0x3cb PF: > { %s19_s30 = sadd.s32 1, %s1480_s30  }
 0x3cc   : > { %p16_p7 = scmp.ge.s32.totalorder %s19_s30, 6  }
 0x3ce   :  { %18 = sbr.rel (!%p16_p7) target bundleno = 1 (0x1), region = 93 }

</bundles_post_ra>
